<compile_context>
chip_gen: v5e
topology: v5e:2x2
jax: 0.10.0
libtpu: 0.0.40
codegen_flags: <defaults>
</compile_context>

<pallas_src>
import functools

import jax
import jax.numpy as jnp
from jax.experimental import pallas as pl
from jax.experimental.pallas import tpu as pltpu


def _round_up(n: int, m: int) -> int:
    return ((n + m - 1) // m) * m


def _regularizer_kernel(x_ref, w_ref, b_ref, out_ref, *,
                        reg_transform: str, true_b: int, tile_b: int):
    """One B-tile: phi = x @ W + b, max over K, transform, masked partial sum."""
    i = pl.program_id(0)

    # phi_fn: bf16 operands on the MXU, f32 accumulation.
    phi = jnp.dot(x_ref[...], w_ref[...],
                  preferred_element_type=jnp.float32)            # (TB, K) f32
    phi = phi + b_ref[...]                                       # bias (1, K) f32

    # torch.max(all_phi_values, dim=1)[0]  -> reduce over K (lane axis).
    max_phi = jnp.max(phi, axis=1, keepdims=True)                # (TB, 1) f32

    # Elementwise transform kept in f32 (v5e VPU/EUP have no bf16 path; tiny op).
    if reg_transform == "sigmoid":
        t = jax.nn.sigmoid(0.3 * max_phi)
    elif reg_transform == "softplus":
        t = jax.nn.softplus(max_phi)
    else:
        raise ValueError(f"unknown reg_transform: {reg_transform}")

    # Zero out padded rows of a ragged final tile so the global mean is exact.
    row_ids = i * tile_b + jax.lax.broadcasted_iota(jnp.int32, (tile_b, 1), 0)
    t = jnp.where(row_ids < true_b, t, 0.0)

    # Per-tile partial sum written to an independent, (8,128)-aligned output
    # block: keeps the B grid axis parallel.  reg_weight and 1/B are applied
    # once in the wrapper.
    tile_sum = jnp.sum(t)
    out_ref[...] = jnp.broadcast_to(tile_sum, out_ref.shape)


def regularizer_forward(x, w, b, *, reg_weight=0.5, reg_transform="sigmoid",
                        tile_b=None):
    """Pallas equivalent of Regularizer.forward with phi_fn = x @ w + b."""
    B, D = x.shape
    Dw, K = w.shape
    assert D == Dw and b.shape == (1, K)
    assert reg_weight >= 0.0

    # Stream x / W as bf16 (mem-bound regime -> halves HBM bytes); bias in f32.
    x_bf = x.astype(jnp.bfloat16)
    w_bf = w.astype(jnp.bfloat16)
    b_f32 = b.astype(jnp.float32)

    # B-tile: large enough to amortize per-grid-step overhead, small enough to
    # fit the (double-buffered) scoped VMEM budget on all generations.
    if tile_b is None:
        tile_b = min(512, _round_up(B, 8))
    tile_b = max(8, _round_up(int(tile_b), 8))
    num_tiles = pl.cdiv(B, tile_b)

    # VMEM estimate: double-buffered x tile + resident W/b + output block +
    # f32 phi intermediate, with 2x headroom; clamped for v7x (64 MiB per TC).
    vmem_needed = (2 * tile_b * D * 2          # x tile (bf16), double-buffered
                   + 2 * D * K * 2             # W (bf16)
                   + 2 * K * 4                 # bias (f32)
                   + 2 * 8 * 128 * 4           # output block, double-buffered
                   + 2 * tile_b * K * 4)       # f32 phi intermediate
    vmem_limit = int(min(max(2 * vmem_needed, 16 << 20), 48 << 20))

    kernel = functools.partial(
        _regularizer_kernel,
        reg_transform=reg_transform,
        true_b=int(B),
        tile_b=int(tile_b),
    )

    cost = pl.CostEstimate(
        flops=2 * B * D * K,
        transcendentals=B,
        bytes_accessed=(x_bf.size * 2 + w_bf.size * 2 + b_f32.size * 4
                        + num_tiles * 8 * 128 * 4),
    )

    partials = pl.pallas_call(
        kernel,
        out_shape=jax.ShapeDtypeStruct((num_tiles, 8, 128), jnp.float32),
        grid_spec=pltpu.PrefetchScalarGridSpec(
            num_scalar_prefetch=0,
            grid=(num_tiles,),
            in_specs=[
                pl.BlockSpec((tile_b, D), lambda i: (i, 0)),   # x: streamed
                pl.BlockSpec((D, K), lambda i: (0, 0)),        # W: resident
                pl.BlockSpec((1, K), lambda i: (0, 0)),        # b: resident
            ],
            out_specs=pl.BlockSpec((1, 8, 128), lambda i: (i, 0, 0)),
        ),
        compiler_params=pltpu.CompilerParams(
            dimension_semantics=("parallel",),
            vmem_limit_bytes=vmem_limit,
        ),
        cost_estimate=cost,
    )(x_bf, w_bf, b_f32)

    # Hoisted finalize: reg = reg_weight * mean(transform) over the true B.
    return (reg_weight / B) * jnp.sum(partials[:, 0, 0])


def regularizer_reference(x, w, b, *, reg_weight=0.5, reg_transform="sigmoid"):
    phi = x.astype(jnp.float32) @ w.astype(jnp.float32) + b.astype(jnp.float32)
    max_phi = jnp.max(phi, axis=1)
    if reg_transform == "sigmoid":
        t = jax.nn.sigmoid(0.3 * max_phi)
    else:
        t = jax.nn.softplus(max_phi)
    return reg_weight * jnp.mean(t)


if __name__ == "__main__":
    # Small shapes; B deliberately NOT a multiple of tile_b so the ragged-tile
    # masking path is exercised.  K=128 constraint values, D=32 features.
    B, D, K = 24, 32, 128
    tile_b = 16                       # -> grid of 2 B-tiles, last one ragged
    reg_weight = 0.5

    key = jax.random.PRNGKey(0)
    kx, kw, kb = jax.random.split(key, 3)
    x = jax.random.normal(kx, (B, D), dtype=jnp.float32)
    # Deterministic phi_fn parameters (synthetic linear layer).
    w = jax.random.normal(kw, (D, K), dtype=jnp.float32) / jnp.sqrt(D)
    b = jax.random.normal(kb, (1, K), dtype=jnp.float32) * 0.1

    for transform in ("sigmoid", "softplus"):
        reg = regularizer_forward(x, w, b, reg_weight=reg_weight,
                                  reg_transform=transform, tile_b=tile_b)
        reg = jax.block_until_ready(reg)

        # Tight check vs. a reference fed the same bf16-cast operands.
        ref_bf = regularizer_reference(
            x.astype(jnp.bfloat16), w.astype(jnp.bfloat16), b,
            reg_weight=reg_weight, reg_transform=transform)
        assert jnp.allclose(reg, ref_bf, atol=1e-5, rtol=1e-4), \
            (transform, float(reg), float(ref_bf))

        # Looser check vs. the full-f32 reference (bf16 input quantization).
        ref_f32 = regularizer_reference(
            x, w, b, reg_weight=reg_weight, reg_transform=transform)
        assert jnp.allclose(reg, ref_f32, atol=5e-3, rtol=5e-3), \
            (transform, float(reg), float(ref_f32))

    print("KERNEL_OK")
</pallas_src>

<mosaic_0001>
module attributes {stable_mosaic.version = 11 : i64} {
  func.func @_regularizer_kernel(%arg0: i32, %arg1: memref<16x32xbf16, #tpu.memory_space<vmem>>, %arg2: memref<32x128xbf16, #tpu.memory_space<vmem>>, %arg3: memref<1x128xf32, #tpu.memory_space<vmem>>, %arg4: memref<1x8x128xf32, #tpu.memory_space<vmem>>) attributes {dimension_semantics = [#tpu.dimension_semantics<parallel>], iteration_bounds = array<i64: 2>, scalar_prefetch = 0 : i64, scratch_operands = 0 : i64, tpu.core_type = #tpu.core_type<tc>, window_params = [{transform_indices = @transform_0, window_bounds = array<i64: 16, 32>}, {pipeline_mode = #tpu.pipeline_mode<synchronous>, transform_indices = @transform_1, window_bounds = array<i64: 32, 128>}, {pipeline_mode = #tpu.pipeline_mode<synchronous>, transform_indices = @transform_2, window_bounds = array<i64: 1, 128>}, {transform_indices = @transform_3, window_bounds = array<i64: 1, 8, 128>}]} {
    %c0 = arith.constant 0 : index
    %c0_0 = arith.constant 0 : index
    %0 = vector.load %arg1[%c0, %c0_0] : memref<16x32xbf16, #tpu.memory_space<vmem>>, vector<16x32xbf16>
    %c0_1 = arith.constant 0 : index
    %c0_2 = arith.constant 0 : index
    %1 = vector.load %arg2[%c0_1, %c0_2] : memref<32x128xbf16, #tpu.memory_space<vmem>>, vector<32x128xbf16>
    %cst = arith.constant dense<0.000000e+00> : vector<16x128xf32>
    %2 = tpu.matmul %0, %1, %cst {dimension_numbers = #tpu.dot_dimension_numbers<[1], [0], [0], [1], [0, 0, 1, 1], [], []>} : vector<16x32xbf16>, vector<32x128xbf16>, vector<16x128xf32> -> vector<16x128xf32>
    %c0_3 = arith.constant 0 : index
    %c0_4 = arith.constant 0 : index
    %3 = vector.load %arg3[%c0_3, %c0_4] : memref<1x128xf32, #tpu.memory_space<vmem>>, vector<1x128xf32>
    %4 = vector.broadcast %3 : vector<1x128xf32> to vector<16x128xf32>
    %5 = arith.addf %2, %4 : vector<16x128xf32>
    %cst_5 = arith.constant dense<0xFF800000> : vector<16xf32>
    %6 = vector.multi_reduction <maximumf>, %5, %cst_5 [1] : vector<16x128xf32> to vector<16xf32>
    %7 = vector.shape_cast %6 : vector<16xf32> to vector<16x1xf32>
    %cst_6 = arith.constant 3.000000e-01 : f32
    %8 = vector.broadcast %cst_6 : f32 to vector<16x1xf32>
    %9 = arith.mulf %8, %7 : vector<16x1xf32>
    %10 = arith.negf %9 : vector<16x1xf32>
    %11 = math.exp %10 : vector<16x1xf32>
    %cst_7 = arith.constant 1.000000e+00 : f32
    %12 = vector.broadcast %cst_7 : f32 to vector<16x1xf32>
    %13 = arith.addf %12, %11 : vector<16x1xf32>
    %14 = arith.divf %12, %13 : vector<16x1xf32>
    %c16_i32 = arith.constant 16 : i32
    %15 = arith.muli %arg0, %c16_i32 : i32
    %16 = tpu.iota {dimensions = array<i32: 0>} : vector<16x1xi32>
    %17 = vector.broadcast %15 : i32 to vector<16x1xi32>
    %18 = arith.addi %17, %16 : vector<16x1xi32>
    %c24_i32 = arith.constant 24 : i32
    %19 = vector.broadcast %c24_i32 : i32 to vector<16x1xi32>
    %20 = arith.cmpi slt, %18, %19 : vector<16x1xi32>
    %cst_8 = arith.constant 0.000000e+00 : f32
    %21 = vector.broadcast %cst_8 : f32 to vector<16x1xf32>
    %22 = arith.select %20, %14, %21 : vector<16x1xi1>, vector<16x1xf32>
    %23 = vector.shape_cast %22 : vector<16x1xf32> to vector<1x16x1xf32>
    %cst_9 = arith.constant dense<0.000000e+00> : vector<1xf32>
    %24 = vector.multi_reduction <add>, %23, %cst_9 [1, 2] : vector<1x16x1xf32> to vector<1xf32>
    %25 = vector.shape_cast %24 : vector<1xf32> to vector<1x1x1xf32>
    %26 = vector.extract %25[0, 0, 0] : f32 from vector<1x1x1xf32>
    %27 = vector.broadcast %26 : f32 to vector<1x8x128xf32>
    %c0_10 = arith.constant 0 : index
    %c0_11 = arith.constant 0 : index
    %c0_12 = arith.constant 0 : index
    %28 = vector.load %arg4[%c0_10, %c0_11, %c0_12] : memref<1x8x128xf32, #tpu.memory_space<vmem>>, vector<1x8x128xf32>
    tpu.vector_store %arg4[%c0_10, %c0_11, %c0_12], %27 {strides = array<i32>} : memref<1x8x128xf32, #tpu.memory_space<vmem>>, vector<1x8x128xf32>,
    return
  }
  func.func @transform_0(%arg0: i32) -> (i32, i32) {
    %c0_i32 = arith.constant 0 : i32
    %c0_i32_0 = arith.constant 0 : i32
    return %arg0, %c0_i32 : i32, i32
  }
  func.func @transform_1(%arg0: i32) -> (i32, i32) {
    %c0_i32 = arith.constant 0 : i32
    %c0_i32_0 = arith.constant 0 : i32
    %c0_i32_1 = arith.constant 0 : i32
    return %c0_i32, %c0_i32_0 : i32, i32
  }
  func.func @transform_2(%arg0: i32) -> (i32, i32) {
    %c0_i32 = arith.constant 0 : i32
    %c0_i32_0 = arith.constant 0 : i32
    %c0_i32_1 = arith.constant 0 : i32
    return %c0_i32, %c0_i32_0 : i32, i32
  }
  func.func @transform_3(%arg0: i32) -> (i32, i32, i32) {
    %c0_i32 = arith.constant 0 : i32
    %c0_i32_0 = arith.constant 0 : i32
    %c0_i32_1 = arith.constant 0 : i32
    return %arg0, %c0_i32, %c0_i32_0 : i32, i32, i32
  }
}

</mosaic_0001>

<bundles_post_ra>
// kernel: tpu_custom_call.1
= control target key start
LH: loop header
LB: loop body
LE: loop exit
PB: predicated region body
PF: predicated region fallthrough
CT: control target
= control target key end

     0   :  { %8 = vsyncpa [#allocation3], 0  ;;  %s881_s0 = inlined_call_operand.hbm [shape: bf16[24,32], index: 0, kind: input, shape index: {}]   ;;  %s882_s1 = inlined_call_operand.hbm [shape: bf16[32,128], index: 1, kind: input, shape index: {}]   ;;  %s883_s2 = inlined_call_operand.vmem [shape: f32[1,128], index: 2, kind: input, shape index: {}]   ;;  %s884_s3 = inlined_call_operand.hbm [shape: f32[2,8,128], index: 3, kind: output, shape index: {}]  }
   0x1   :  { %10 = vsyncpa [#allocation3 + $0x1], 0 }
   0x2   :  { %11 = vsyncpa [#allocation6], 0 }
   0x3   :  { %12 = vsyncpa [#allocation4], 0 }
   0x4   :  { %14 = vsyncpa [#allocation4 + $0x1], 0  ;;  %s704_s12 = smov 0   ;;  %s706_s13 = smov 0  }
   0x5   :  { %s708_s14 = smov 0   ;;  %s710_s15 = smov 0  }
   0x6 LB: > { %s725_s16 = sadd.s32 4294967295, %s676_s15   ;;  %s432_s17 = sadd.s32 4294967294, %s676_s15   ;;  %s676_s15 = sphi %s710_s15, %s900_s15   ;;  %s672_s14 = sphi %s708_s14, %s899_s14   ;;  %s668_s13 = sphi %s706_s13, %s898_s13   ;;  %s664_s12 = sphi %s704_s12, %s897_s12  }
   0x7   : > { %s729_s18 = sadd.s32 1, %s676_s15   ;;  %s27_s19 = sadd.s32 1, %s672_s14 }
   0x8   : > { %s24_s20 = ssub.s32 %s676_s15, %s729_s18  ;;  %p34_p0 = scmp.ne.s32.totalorder %s672_s14, %s668_s13 }
   0x9   : > { %p25_p1 = scmp.eq.s32.totalorder %s24_s20, 0  ;;  %p35_p2 = scmp.eq.s32.totalorder %s676_s15, 0 }
   0xa   : > { %p40_p3 = scmp.ne.s32.totalorder %s668_s13, %s664_s12  ;;  %p886_p4 = scmp.eq.s32.totalorder %s725_s16, 0 }
   0xb   : > { %s741_s21 = scalar_select %p25_p1, %s672_s14, %s27_s19  }
   0xc   : > { %p743_p5 = por %p35_p2, %p34_p0  ;;  %p749_p6 = por %p886_p4, %p40_p3 }
   0xd   : > { %p106_p7 = scmp.eq.s32.totalorder %s725_s16, 1  ;;  %p112_p8 = scmp.eq.s32.totalorder %s432_s17, 1 }
   0xe   : > { %p433_p9 = scmp.ge.s32.totalorder %s676_s15, 1  ;;  %p119_p10 = scmp.lt.s32.totalorder %s676_s15, 3 }
   0xf   : > { %p756_p11 = por %p106_p7, %p34_p0  ;;  %p760_p12 = por %p112_p8, %p40_p3 }
  0x10   : > { %p764_p13 = pnand %p433_p9, %p119_p10  ;;  %s130_s29 = sshll.u32 %s882_s1, 4  ;;  %s131_s29 = int_to_ptr.hbm [resolvable:$true] %s130_s29 }
  0x11   : > { %s890_s25 = scalar_select %p760_p12, 1, 0 }
  0x12   : > { %p480_p1 = pneg %p764_p13  ;;  %s678_s30 = smov [#allocation5]  }
  0x13   : > { %s132_s4 = sshll.u32 %s678_s30, 4  ;;  %s679_s5 = smov 64   ;;  %s133_s4 = int_to_ptr.vmem [resolvable:$true] %s132_s4 }
  0x14   : > { %p481_p0 = pnand %p480_p1, %p886_p4  ;;  %s680_s6 = smov 4  }
  0x15   : > { %p885_p2 = scmp.ge.s32.totalorder %s676_s15, 2 }
  0x16   : > { %483 = dma.hbm_to_vmem [thread:$0]  (!%p481_p0), %s131_s29, 256, %s133_s4, [#allocation6], %s679_s5, %s679_s5, %s680_s6  }
  0x17   : > { %145 = sbr.rel (%p885_p2) target bundleno = 64 (0x40), region = 24 }
  0x1c   : > { %148 = sbr.rel (!%p743_p5) target bundleno = 64 (0x40), region = 28  ;;  %s149_s7 = sand.u32 (%p743_p5), 1, %s672_s14  }
  0x1d   : > { %s437_s8 = sshll.u32 (%p743_p5), %s676_s15, 1  ;;  %s436_s9 = sshll.u32 (%p743_p5), %s149_s7, 3 }
  0x1e   : > { %s155_s10 = ssub.s32 (%p743_p5), 3, %s437_s8  ;;  %s785_s20 = scalar_lea.sflag (%p743_p5), [#allocation3], %s149_s7 }
  0x1f   : > { %p156_p3 = scmp.lt.s32.totalorder (%p743_p5), %s155_s10, 2  ;;  %s153_s27 = scalar_lea.vmem (%p743_p5), [#allocation2], %s436_s9 }
  0x21   : > { %s902_s10 = smov (!%p156_p3, %s155_s10), 2 }
  0x22   : > { %s438_s11 = sshll.u32 %s902_s10, 2 }
  0x23   : > { %s159_s17 = ssub.s32 8, %s438_s11 }
  0x24   : > { %s160_s19 = sshll.u32 %s159_s17, 4 }
  0x25   : > { %161 = vsyncadd %s785_s20, %s160_s19  ;;  %p788_p5 = scmp.ne.s32.totalorder %s438_s11, 0  ;;  %s467_s28 = sshll.u32 %s676_s15, 3 }
  0x26   : > { %s164_s4 = scalar_lea.hbm %s881_s0, %s467_s28  ;;  %s796_s5 = sshll.u32 %s153_s27, 4  ;;  %s169_s5 = int_to_ptr.vmem [resolvable:$true] %s796_s5 }
  0x27   : > { %s166_s6 = sshll.u32 %s164_s4, 4  ;;  %s442_s7 = sshll.u32 %s902_s10, 6  ;;  %s799_s6 = int_to_ptr.hbm [resolvable:$true] %s166_s6 }
  0x28   : > { %s567_s8 = sshra.s32 %s799_s6, 4  ;;  %s569_s9 = sshrl.u32 %s442_s7, 4  ;;  %s568_s8 = int_to_ptr.hbm [resolvable:$true] %s567_s8 }
  0x29   : > { %s574_s11 = scalar_lea.hbm %s568_s8, %s569_s9  ;;  %s578_s27 = scalar_lea.hbm %s881_s0, 12 }
  0x2a   : > { %p575_p7 = scmp.ne.s32.totalorder %s568_s8, %s574_s11  ;;  %p579_p10 = scmp.lt.s32.totalorder %s568_s8, %s881_s0 }
  0x2b   : > { %p580_p1 = scmp.lt.s32.totalorder %s578_s27, %s574_s11 }
  0x2c   : > { %p576_p8 = pnand %p575_p7, %p788_p5 }
  0x2d   : > { %p581_p0 = por %p580_p1, %p579_p10 }
  0x2e   : > { %p577_p9 = pneg %p576_p8 }
  0x30   : > { %p582_p3 = pnand %p581_p0, %p577_p9 }
  0x32   : > { %585 = shalt.err (!%p582_p3)
}
  0x33   : > { %s586_s30 = sshra.s32 %s169_s5, 4  ;;  %s681_s17 = smov [#allocation2]   ;;  %s587_s30 = int_to_ptr.vmem [resolvable:$true] %s586_s30 }
  0x34   : > { %s593_s4 = scalar_lea.vmem %s587_s30, %s569_s9  ;;  %s597_s19 = scalar_lea.vmem %s681_s17, 16 }
  0x35   : > { %p594_p7 = scmp.ne.s32.totalorder %s587_s30, %s593_s4  ;;  %p599_p4 = scmp.lt.s32.totalorder %s597_s19, %s593_s4 }
  0x37   : > { %p595_p8 = pnand %p594_p7, %p788_p5 }
  0x39   : > { %p596_p2 = pneg %p595_p8 }
  0x3b   : > { %p601_p12 = pnand %p599_p4, %p596_p2 }
  0x3d   : > { %604 = shalt.err (!%p601_p12)
}
  0x3e   : > { %s682_s8 = smov 64   ;;  %s683_s11 = smov 4  }
  0x3f   : > { %174 = dma.hbm_to_vmem [thread:$0]  (%p788_p5), %s799_s6, %s442_s7, %s169_s5, %s785_s20, %s682_s8, %s682_s8, %s683_s11  }
  0x40 PF: > { %180 = sbr.rel (%p764_p13) target bundleno = 549 (0x225), region = 32  ;;  %s828_s9 = sand.u32 (!%p764_p13), 1, %s668_s13  }
  0x41   : > { %s444_s27 = sshll.u32 (!%p764_p13), %s828_s9, 3  ;;  %s183_s28 = scalar_lea.sflag (!%p764_p13), [#allocation3], %s828_s9 }
  0x42   : > { %s186_s29 = scalar_lea.vmem (!%p764_p13), [#allocation2], %s444_s27 }
  0x45   : > { %651 = dma.done.wait (%p749_p6), %s183_s28, 128  }
  0x46   : > { %653 = vsyncadd (%p749_p6), %s183_s28, 4294967168  ;;  %p893_p4 = scmp.eq.s32.totalorder %s725_s16, 0 }
  0x48   : > { %655 = dma.done.wait (%p893_p4), [#allocation6], 256   ;;  %p894_p12 = pmov %p893_p4 }
  0x49   : > { %v470_v0 = vld [vmem:[#allocation5 + $0x8] sm:$0xff]  ;;  %v469_v1 = vld [vmem:[#allocation5] sm:$0xff]  ;;  %v468_v2 = vld [vmem:[%s186_s29] sm:$0xff]  ;;  %vm248_vm0 = vcmask 261120   ;;  %v311_v20 = vlaneseq  ;;  %s462_s23 = sshll.u32 %s725_s16, 4  ;;  %vm321_vm11 = vcmask 7168  }
  0x4a   : > { %657 = vsyncadd (%p894_p12), [#allocation6], 4294967040  ;;  %258 = vmatpush.bf16.msra.mxu0 %v470_v0  ;;  %v528_v3 = vld [vmem:[%s883_s2] ss:$0 sm:$0xff]  ;;  %v314_v25 = vstv %s462_s23  ;;  %s464_s20 = sshll.u32 %s725_s16, 3  ;;  %s214_s7 = scalar_lea.vmem [#allocation7], %s444_s27 }
  0x4b   : > { %v312_v23 = vshrl.u32 %v311_v20, 7  ;;  %s347_s6 = scalar_lea.hbm %s884_s3, %s464_s20  ;;  %s349_s30 = sshll.u32 %s214_s7, 4  ;;  %s350_s30 = int_to_ptr.vmem [resolvable:$true] %s349_s30 }
  0x4c   : > { %s351_s4 = sshll.u32 %s347_s6, 4  ;;  %s337_s19 = scalar_lea.sflag [#allocation4], %s828_s9  ;;  %s352_s4 = int_to_ptr.hbm [resolvable:$true] %s351_s4 }
  0x4d   : > { %v313_v28 = vadd.s32 8, %v312_v23  ;;  %v315_v31 = vadd.s32 %v314_v25, %v312_v23  ;;  %s620_s8 = sshra.s32 %s352_s4, 4  ;;  %s626_s29 = scalar_lea.hbm %s884_s3, 16  ;;  %s621_s8 = int_to_ptr.hbm [resolvable:$true] %s620_s8 }
  0x4e   : > { %259 = vmatpush.bf16.msra.mxu0 %v469_v1  ;;  %s622_s11 = scalar_lea.hbm %s621_s8, 8  ;;  %p627_p5 = scmp.lt.s32.totalorder %s621_s8, %s884_s3 }
  0x4f   : > { %v316_v36 = vadd.s32 %v314_v25, %v313_v28  ;;  %vm317_vm6 = vcmp.lt.s32.totalorder %v315_v31, 24  ;;  %p623_p6 = scmp.ne.s32.totalorder %s621_s8, %s622_s11  ;;  %p628_p9 = scmp.lt.s32.totalorder %s626_s29, %s622_s11 }
  0x51   : > { %459 = vmatmul.msk.bf16.vlgmr.msra.gmra.mxu0 %vm248_vm0, %v468_v2  ;;  %vm318_vm9 = vcmp.lt.s32.totalorder %v316_v36, 24  ;;  %p624_p13 = pnand %p623_p6, %p756_p11  ;;  %p629_p10 = por %p628_p9, %p627_p5 }
  0x53   : > { %p625_p2 = pneg %p624_p13 }
  0x55   : > { %p630_p1 = pnand %p629_p10, %p625_p2 }
  0xce   : > { %v261_v4 = vpop.f32.mrf.mxu0 }
  0xcf   : > { %v262_v5 = vadd.f32 %v528_v3, %v261_v4 }
  0xd1   : > { %266 = vmax.xlane.f32.xlu0 %v262_v5 }
  0xd6   : > { %v263_v6 = vpop.f32.mrf.mxu0 }
  0xd7   : > { %v264_v7 = vadd.f32 %v528_v3, %v263_v6 }
  0xd9   : > { %268 = vmax.xlane.f32.xlu0 %v264_v7 }
 0x144   : > { %v267_v8 = vpop.xlane.xlu0 %266 }
 0x145   : > { %v460_v9 = vmul.f32 -0.3, %v267_v8 }
 0x147   : > { %v274_v10 = vmul.f32 1.442695, %v460_v9 }
 0x149   : > { %529 = vpow2.f32 %v274_v10 }
 0x14c   : > { %v269_v11 = vpop.xlane.xlu0 %268 }
 0x14d   : > { %v461_v12 = vmul.f32 -0.3, %v269_v11 }
 0x14f   : > { %v530_v13 = vpop.eup %529  ;;  %v276_v14 = vmul.f32 1.442695, %v461_v12 }
 0x150   : > { %v278_v15 = vadd.f32 1.0, %v530_v13 }
 0x151   : > { %531 = vpow2.f32 %v276_v14 }
 0x152   : > { %533 = vrcp.f32 %v278_v15  ;;  %v291_v27 = vand.u32 2147483648, %v278_v15  ;;  %vm285_vm2 = vweird.f32 %v278_v15  ;;  %v289_v29 = vand.u32 2147483647, %v278_v15 }
 0x154   : > { %v292_v34 = vor.u32 1.1754944e-38, %v291_v27  ;;  %vm290_vm4 = vcmp.eq.f32.partialorder %v289_v29, 8.507059e+37 }
 0x157   : > { %v532_v16 = vpop.eup %531 }
 0x158   : > { %v534_v17 = vpop.eup %533  ;;  %v279_v18 = vadd.f32 1.0, %v532_v16 }
 0x159   : > { %v281_v19 = vmul.f32 %v534_v17, %v278_v15  ;;  %vm286_vm1 = vweird.f32 %v534_v17 }
 0x15a   : > { %535 = vrcp.f32 %v279_v18  ;;  %vm287_vm3 = vmor %vm285_vm2, %vm286_vm1  ;;  %v306_v35 = vand.u32 2147483648, %v279_v18  ;;  %v304_v38 = vand.u32 2147483647, %v279_v18  ;;  %vm300_vm7 = vweird.f32 %v279_v18 }
 0x15b   : > { %v282_v21 = vsub.f32 1.0, %v281_v19 }
 0x15c   : > { %v307_v41 = vor.u32 1.1754944e-38, %v306_v35  ;;  %vm305_vm10 = vcmp.eq.f32.partialorder %v304_v38, 8.507059e+37 }
 0x15d   : > { %v283_v22 = vmul.f32 %v534_v17, %v282_v21 }
 0x15f   : > { %v284_v24 = vadd.f32 %v534_v17, %v283_v22 }
 0x160   : > { %v536_v26 = vpop.eup %535 }
 0x161   : > { %v296_v30 = vmul.f32 %v536_v26, %v279_v18  ;;  %v288_v32 = vsel %vm287_vm3, %v534_v17, %v284_v24  ;;  %vm301_vm5 = vweird.f32 %v536_v26 }
 0x162   : > { %v293_v39 = vsel %vm290_vm4, %v292_v34, %v288_v32  ;;  %vm302_vm8 = vmor %vm300_vm7, %vm301_vm5 }
 0x163   : > { %v297_v33 = vsub.f32 1.0, %v296_v30  ;;  %v319_v43 = vsel %vm317_vm6, %v293_v39, 0.0 }
 0x164   : > { %v322_v46 = vsel %vm321_vm11, %v319_v43, 0.0 }
 0x165   : > { %v298_v37 = vmul.f32 %v536_v26, %v297_v33 }
 0x167   : > { %v299_v40 = vadd.f32 %v536_v26, %v298_v37 }
 0x169   : > { %v303_v42 = vsel %vm302_vm8, %v536_v26, %v299_v40 }
 0x16a   : > { %v308_v44 = vsel %vm305_vm10, %v307_v41, %v303_v42 }
 0x16b   : > { %v320_v45 = vsel %vm318_vm9, %v308_v44, 0.0 }
 0x16c   : > { %v323_v47 = vsel %vm321_vm11, %v320_v45, 0.0 }
 0x16d   : > { %v324_v48 = vadd.f32 %v323_v47, %v322_v46 }
 0x16f   : > { %325 = vadd.xlane.f32.xlu1 %v324_v48 }
 0x1e2   : > { %v326_v49 = vpop.xlane.xlu1 %325 }
 0x1e3   : > { %v327_v50 = vrot.slane %v326_v49, 4 }
 0x1e5   : > { %v328_v51 = vadd.f32 %v327_v50, %v326_v49 }
 0x1e7   : > { %v329_v52 = vrot.slane %v328_v51, 2 }
 0x1e9   : > { %v330_v53 = vadd.f32 %v329_v52, %v328_v51 }
 0x1eb   : > { %v331_v54 = vrot.slane %v330_v53, 1 }
 0x1ed   : > { %v332_v55 = vadd.f32 %v331_v54, %v330_v53 }
 0x1ef   : > { %471 = vpush %v332_v55 }
 0x220   : > { %s472_s17 = spop %471 }
 0x221   : > { %v334_v56 = vstv %s472_s17 }
 0x222   : > { %335 = vst [vmem:[%s214_s7] sm:$0xff] %v334_v56 }
 0x223   : > { %633 = shalt.err (!%p630_p1)
}
 0x224   : > { %478 = dma.vmem_to_hbm [thread:$0]  (%p756_p11), %s350_s30, 128, %s352_s4, %s337_s19  }
 0x225 PF: > { %s363_s9 = sand.u32 1, %s664_s12   ;;  %p895_p0 = scmp.ne.s32.totalorder %s890_s25, 0 }
 0x226   : > { %p896_p3 = scmp.ge.s32.totalorder %s676_s15, 2  ;;  %s364_s10 = scalar_lea.sflag [#allocation4], %s363_s9 }
 0x228   : > { %p485_p7 = pnand %p896_p3, %p895_p0 }
 0x22a   : > { %p486_p8 = pneg %p485_p7 }
 0x22c   : > { %659 = dma.done.wait (%p486_p8), %s364_s10, 128  }
 0x22d   : > { %661 = vsyncadd (%p486_p8), %s364_s10, 4294967168  ;;  %p17_p4 = scmp.ge.s32.totalorder %s729_s18, 4   ;;  %s897_s12 = smov %s668_s13 }
 0x22e   : > { %s898_s13 = smov %s672_s14  ;;  %s899_s14 = smov %s741_s21 }
 0x22f   : > { %s900_s15 = smov %s729_s18  ;;  %19 = sbr.rel (!%p17_p4) target bundleno = 6 (0x6), region = 81 }
 0x234   :  { %370 = vsyncpa [#allocation3], 1 }
 0x235   :  { %372 = vsyncpa [#allocation3 + $0x1], 1 }
 0x236   :  { %373 = vsyncpa [#allocation6], 1 }
 0x237   :  { %374 = vsyncpa [#allocation4], 1 }
 0x238   :  { %376 = vsyncpa [#allocation4 + $0x1], 1 }

</bundles_post_ra>
